<compile_context>
chip_gen: v5e
topology: v5e:2x2
jax: 0.10.0
libtpu: 0.0.40
codegen_flags: <defaults>
</compile_context>

<pallas_src>
import functools

import jax
import jax.numpy as jnp
from jax.experimental import pallas as pl
from jax.experimental.pallas import tpu as pltpu


def _round_up(v, m):
    return (v + m - 1) // m * m


# ----------------------------------- kernel ----------------------------------
def _highway_kernel(*refs, H, Hp, first, couple):
    """One batch tile of HighwayBlock.forward.

    Gate column layout (built by fuse_highway_params), Hp = round_up(H, 128):
        [0:Hp) -> H gate, [Hp:2Hp) -> T gate, [2Hp:3Hp) -> C gate,
    so every gate slice of z starts on a 128-lane vreg boundary.
    """
    if first:
        x_ref, s_ref, mask_ref, w_ref, r_ref, b_ref, o_ref = refs
    else:
        s_ref, mask_ref, r_ref, b_ref, o_ref = refs

    s = s_ref[...]
    sm = s * mask_ref[...]                       # stays in the activation dtype

    # One wide MXU matmul per input path (all gates fused), f32 accumulation.
    z = jnp.dot(sm, r_ref[...], preferred_element_type=jnp.float32)
    if first:
        z = z + jnp.dot(x_ref[...], w_ref[...], preferred_element_type=jnp.float32)
    z = z + b_ref[...]                           # single pre-folded f32 bias

    h = jnp.tanh(z[:, :Hp])
    t = jax.nn.sigmoid(z[:, Hp:2 * Hp])
    c = (1.0 - t) if couple else jax.nn.sigmoid(z[:, 2 * Hp:3 * Hp])
    if Hp != H:                                  # drop pad lanes (starts stay aligned)
        h, t, c = h[:, :H], t[:, :H], c[:, :H]

    o_ref[...] = (h * t + s.astype(jnp.float32) * c).astype(o_ref.dtype)


# ------------------------------ parameter fusion ------------------------------
def fuse_highway_params(params, *, out_features, first=False, couple=False,
                        weight_dtype=jnp.bfloat16):
    """Transpose / concatenate / lane-pad / cast the per-gate nn.Linear weights.

    Call ONCE outside any time-step loop (the XLA-side transpose/concat/cast is
    then amortized across the whole recurrence).  Weights are stored in
    `weight_dtype` (use bf16 for the native MXU path); biases stay f32 and are
    pre-folded (bW + bR when `first`).
    """
    H = out_features
    Hp = _round_up(H, 128)

    def prep(w, b):                              # one gate: (H, in)/(H,) torch layout
        wt = jnp.asarray(w, jnp.float32).T       # -> (in, H)
        bb = jnp.asarray(b, jnp.float32)
        if Hp != H:
            wt = jnp.pad(wt, ((0, 0), (0, Hp - H)))
            bb = jnp.pad(bb, ((0, Hp - H),))
        return wt, bb

    def fuse(w2, b2, wc, bc):
        ws, bs = [], []
        for g in range(2):                       # H gate, T gate
            wt, bb = prep(w2[g * H:(g + 1) * H], b2[g * H:(g + 1) * H])
            ws.append(wt); bs.append(bb)
        if not couple:                           # C gate
            wt, bb = prep(wc, bc)
            ws.append(wt); bs.append(bb)
        return (jnp.concatenate(ws, axis=1).astype(weight_dtype),
                jnp.concatenate(bs, axis=0).reshape(1, -1).astype(jnp.float32))

    Rcat, bR = fuse(params["R_w"], params["R_b"],
                    params.get("R_C_w"), params.get("R_C_b"))
    fused = {"Rcat": Rcat}
    if first:
        Wcat, bW = fuse(params["W_w"], params["W_b"],
                        params.get("W_C_w"), params.get("W_C_b"))
        fused["Wcat"] = Wcat
        fused["bias"] = bW + bR                  # fold the two bias adds into one
    else:
        fused["bias"] = bR
    fused["meta"] = dict(out_features=H, padded=Hp, first=first, couple=couple)
    return fused


# ----------------------------------- wrapper ----------------------------------
def _const_spec(shape, single_buffer):
    """Constant-index spec: fetched once, VMEM-resident across all batch tiles.
    Single-buffered when supported (halves resident weight VMEM on v7x)."""
    idx = lambda i: (0,) * len(shape)
    if single_buffer:
        try:
            return pl.BlockSpec(shape, idx, pipeline_mode=pl.Buffered(buffer_count=1))
        except (TypeError, ValueError):
            pass
    return pl.BlockSpec(shape, idx)


def highway_block(x, s, mask, fused, *, block_b=256):
    """Pallas HighwayBlock.forward.

    x     : (B, in_features) or None when the block is not `first`.
    s     : (B, in_features) recurrent state (module implies in == out features).
    mask  : locked-dropout mask, broadcastable to s (e.g. (B, H) or (1, H)).
    fused : output of fuse_highway_params.
    """
    meta = fused["meta"]
    H, Hp = meta["out_features"], meta["padded"]
    first, couple = meta["first"], meta["couple"]
    if first and x is None:
        raise ValueError("x is required when first=True")

    B, Hin = s.shape
    dtype = s.dtype
    Rcat, bias = fused["Rcat"], fused["bias"]
    Wcat = fused.get("Wcat")
    ncat = Rcat.shape[1]

    # ---- mask: keep broadcast dims unexpanded (no (B, Hin) HBM materialization)
    mask = jnp.asarray(mask, dtype)
    if mask.ndim == 0:
        mask = mask.reshape(1, 1)
    elif mask.ndim == 1:
        mask = mask.reshape(1, -1)
    if mask.shape[0] not in (1, B) or mask.shape[1] not in (1, Hin):
        mask = jnp.broadcast_to(mask, (B, Hin))
    mr, mc = mask.shape

    # ---- batch tiling: no wrapper-side padding; ragged last tile handled by
    # Pallas.  Split into >= 2 tiles when B allows so the "parallel" axis can
    # use both v7x TensorCores.
    tb = min(int(block_b), B)
    if B >= 16:
        tb = min(tb, _round_up(pl.cdiv(B, 2), 8))
        tb = max(8, (tb // 8) * 8)
    else:
        tb = B                                   # single full-dim tile
    grid = (pl.cdiv(B, tb),)

    def row_spec(ncols):
        return pl.BlockSpec((tb, ncols), lambda i: (i, 0))

    if mr == B:
        mask_spec = pl.BlockSpec((tb, mc), lambda i: (i, 0))
    else:
        mask_spec = pl.BlockSpec((1, mc), lambda i: (0, 0))

    kernel = functools.partial(_highway_kernel, H=H, Hp=Hp,
                               first=first, couple=couple)

    def run(single_buffer):
        wspec = lambda a: _const_spec(a.shape, single_buffer)
        if first:
            in_specs = [row_spec(x.shape[1]), row_spec(Hin), mask_spec,
                        wspec(Wcat), wspec(Rcat), wspec(bias)]
            args = (x, s, mask, Wcat, Rcat, bias)
        else:
            in_specs = [row_spec(Hin), mask_spec, wspec(Rcat), wspec(bias)]
            args = (s, mask, Rcat, bias)

        # Explicit VMEM budget (matters on v7x's 64 MiB VMEM for large Hin).
        act_sz = jnp.dtype(dtype).itemsize
        w_sz = jnp.dtype(Rcat.dtype).itemsize
        wmult = 1 if single_buffer else 2
        est = (Rcat.size * w_sz * (2 if first else 1) * wmult + bias.size * 4
               + 2 * tb * Hin * act_sz * (3 if first else 2)   # dbl-buffered inputs
               + 2 * tb * H * act_sz                            # dbl-buffered output
               + 2 * tb * ncat * 4)                             # f32 gate intermediates
        vmem_limit = int(min(max(2 * est, 32 * 1024 * 1024), 96 * 1024 * 1024))

        return pl.pallas_call(
            kernel,
            out_shape=jax.ShapeDtypeStruct((B, H), dtype),
            grid=grid,
            in_specs=in_specs,
            out_specs=pl.BlockSpec((tb, H), lambda i: (i, 0)),
            compiler_params=pltpu.CompilerParams(
                dimension_semantics=("parallel",),
                vmem_limit_bytes=vmem_limit),
        )(*args)

    try:
        return run(True)
    except Exception:
        # Fallback if single-buffered (Buffered(1)) weight specs are not
        # supported by the installed JAX / Mosaic version.
        return run(False)


# ----------------------------- pure-JAX reference -----------------------------
def highway_ref(x, s, mask, params, *, out_features, first, couple):
    H = out_features
    sm = s * mask
    r = sm @ params["R_w"].T + params["R_b"]
    R_H, R_T = r[:, :H], r[:, H:2 * H]
    if first:
        w = x @ params["W_w"].T + params["W_b"]
        W_H, W_T = w[:, :H], w[:, H:2 * H]
        h = jnp.tanh(W_H + R_H)
        t = jax.nn.sigmoid(W_T + R_T)
        if couple:
            c = 1.0 - t
        else:
            c = jax.nn.sigmoid(x @ params["W_C_w"].T + params["W_C_b"]
                               + sm @ params["R_C_w"].T + params["R_C_b"])
    else:
        h = jnp.tanh(R_H)
        t = jax.nn.sigmoid(R_T)
        if couple:
            c = 1.0 - t
        else:
            c = jax.nn.sigmoid(sm @ params["R_C_w"].T + params["R_C_b"])
    return h * t + s * c


def init_params(key, in_features, out_features, first, couple):
    H = out_features
    keys = jax.random.split(key, 4)

    def lin(k, out_dim):
        k1, k2 = jax.random.split(k)
        bound = 1.0 / (in_features ** 0.5)
        w = jax.random.uniform(k1, (out_dim, in_features), jnp.float32, -bound, bound)
        b = jax.random.uniform(k2, (out_dim,), jnp.float32, -bound, bound)
        return w, b

    p = {}
    p["R_w"], p["R_b"] = lin(keys[0], 2 * H)
    if not couple:
        p["R_C_w"], p["R_C_b"] = lin(keys[1], H)
    if first:
        p["W_w"], p["W_b"] = lin(keys[2], 2 * H)
        if not couple:
            p["W_C_w"], p["W_C_b"] = lin(keys[3], H)
    return p


if __name__ == "__main__":
    key = jax.random.PRNGKey(0)
    ks = jax.random.split(key, 10)
    keep = 0.75

    # ---- Case 1: first layer, uncoupled carry, f32, H not a multiple of 128
    # (exercises the lane-padded gate layout). --------------------------------
    B1, H1 = 8, 96
    x1 = jax.random.normal(ks[0], (B1, H1), jnp.float32)
    s1 = jax.random.normal(ks[1], (B1, H1), jnp.float32)
    m1 = jax.random.bernoulli(ks[2], keep, (B1, H1)).astype(jnp.float32) / keep
    p1 = init_params(ks[3], H1, H1, first=True, couple=False)
    f1 = fuse_highway_params(p1, out_features=H1, first=True, couple=False,
                             weight_dtype=jnp.float32)
    y1 = jax.block_until_ready(highway_block(x1, s1, m1, f1))
    r1 = highway_ref(x1, s1, m1, p1, out_features=H1, first=True, couple=False)
    assert y1.shape == (B1, H1) and y1.dtype == s1.dtype
    assert bool(jnp.allclose(y1, r1, atol=5e-3, rtol=5e-3)), \
        float(jnp.max(jnp.abs(y1 - r1)))

    # ---- Case 2: non-first step, coupled carry, bf16 activations + bf16
    # weights (native MXU path), ragged two-tile batch grid. ------------------
    B2, H2 = 20, 128
    s2 = jax.random.normal(ks[4], (B2, H2), jnp.float32).astype(jnp.bfloat16)
    m2 = (jax.random.bernoulli(ks[5], keep, (B2, H2)).astype(jnp.float32) / keep
          ).astype(jnp.bfloat16)
    p2 = init_params(ks[6], H2, H2, first=False, couple=True)
    f2 = fuse_highway_params(p2, out_features=H2, first=False, couple=True,
                             weight_dtype=jnp.bfloat16)
    y2 = jax.block_until_ready(highway_block(None, s2, m2, f2))
    r2 = highway_ref(None, s2.astype(jnp.float32), m2.astype(jnp.float32), p2,
                     out_features=H2, first=False, couple=True)
    assert y2.shape == (B2, H2) and y2.dtype == jnp.bfloat16
    assert bool(jnp.allclose(y2.astype(jnp.float32), r2, atol=1e-1, rtol=1e-1)), \
        float(jnp.max(jnp.abs(y2.astype(jnp.float32) - r2)))

    # ---- Case 3: non-first, uncoupled, broadcast (1, H) locked-dropout mask
    # streamed unexpanded (never materialized to (B, H)). ---------------------
    B3, H3 = 16, 128
    s3 = jax.random.normal(ks[7], (B3, H3), jnp.float32)
    m3 = jax.random.bernoulli(ks[8], keep, (1, H3)).astype(jnp.float32) / keep
    p3 = init_params(ks[9], H3, H3, first=False, couple=False)
    f3 = fuse_highway_params(p3, out_features=H3, first=False, couple=False,
                             weight_dtype=jnp.float32)
    y3 = jax.block_until_ready(highway_block(None, s3, m3, f3))
    r3 = highway_ref(None, s3, m3, p3, out_features=H3, first=False, couple=False)
    assert bool(jnp.allclose(y3, r3, atol=5e-3, rtol=5e-3)), \
        float(jnp.max(jnp.abs(y3 - r3)))

    print("KERNEL_OK")
</pallas_src>

<mosaic_0001>
module attributes {stable_mosaic.version = 11 : i64} {
  func.func @_highway_kernel(%arg0: i32, %arg1: memref<8x96xf32, #tpu.memory_space<vmem>>, %arg2: memref<8x96xf32, #tpu.memory_space<vmem>>, %arg3: memref<8x96xf32, #tpu.memory_space<vmem>>, %arg4: memref<96x384xf32, #tpu.memory_space<vmem>>, %arg5: memref<96x384xf32, #tpu.memory_space<vmem>>, %arg6: memref<1x384xf32, #tpu.memory_space<vmem>>, %arg7: memref<8x96xf32, #tpu.memory_space<vmem>>) attributes {dimension_semantics = [#tpu.dimension_semantics<parallel>], iteration_bounds = array<i64: 1>, scalar_prefetch = 0 : i64, scratch_operands = 0 : i64, tpu.core_type = #tpu.core_type<tc>, window_params = [{transform_indices = @transform_0, window_bounds = array<i64: 8, 96>}, {transform_indices = @transform_1, window_bounds = array<i64: 8, 96>}, {transform_indices = @transform_2, window_bounds = array<i64: 8, 96>}, {pipeline_mode = #tpu.pipeline_mode<synchronous>, transform_indices = @transform_3, window_bounds = array<i64: 96, 384>}, {pipeline_mode = #tpu.pipeline_mode<synchronous>, transform_indices = @transform_4, window_bounds = array<i64: 96, 384>}, {pipeline_mode = #tpu.pipeline_mode<synchronous>, transform_indices = @transform_5, window_bounds = array<i64: 1, 384>}, {transform_indices = @transform_6, window_bounds = array<i64: 8, 96>}]} {
    %c0 = arith.constant 0 : index
    %c0_0 = arith.constant 0 : index
    %0 = vector.load %arg2[%c0, %c0_0] : memref<8x96xf32, #tpu.memory_space<vmem>>, vector<8x96xf32>
    %c0_1 = arith.constant 0 : index
    %c0_2 = arith.constant 0 : index
    %1 = vector.load %arg3[%c0_1, %c0_2] : memref<8x96xf32, #tpu.memory_space<vmem>>, vector<8x96xf32>
    %2 = arith.mulf %0, %1 : vector<8x96xf32>
    %c0_3 = arith.constant 0 : index
    %c0_4 = arith.constant 0 : index
    %3 = vector.load %arg5[%c0_3, %c0_4] : memref<96x384xf32, #tpu.memory_space<vmem>>, vector<96x384xf32>
    %cst = arith.constant dense<0.000000e+00> : vector<8x384xf32>
    %4 = tpu.matmul %2, %3, %cst {dimension_numbers = #tpu.dot_dimension_numbers<[1], [0], [0], [1], [0, 0, 1, 1], [], []>} : vector<8x96xf32>, vector<96x384xf32>, vector<8x384xf32> -> vector<8x384xf32>
    %c0_5 = arith.constant 0 : index
    %c0_6 = arith.constant 0 : index
    %5 = vector.load %arg1[%c0_5, %c0_6] : memref<8x96xf32, #tpu.memory_space<vmem>>, vector<8x96xf32>
    %c0_7 = arith.constant 0 : index
    %c0_8 = arith.constant 0 : index
    %6 = vector.load %arg4[%c0_7, %c0_8] : memref<96x384xf32, #tpu.memory_space<vmem>>, vector<96x384xf32>
    %cst_9 = arith.constant dense<0.000000e+00> : vector<8x384xf32>
    %7 = tpu.matmul %5, %6, %cst_9 {dimension_numbers = #tpu.dot_dimension_numbers<[1], [0], [0], [1], [0, 0, 1, 1], [], []>} : vector<8x96xf32>, vector<96x384xf32>, vector<8x384xf32> -> vector<8x384xf32>
    %8 = arith.addf %4, %7 : vector<8x384xf32>
    %c0_10 = arith.constant 0 : index
    %c0_11 = arith.constant 0 : index
    %9 = vector.load %arg6[%c0_10, %c0_11] : memref<1x384xf32, #tpu.memory_space<vmem>>, vector<1x384xf32>
    %10 = vector.broadcast %9 : vector<1x384xf32> to vector<8x384xf32>
    %11 = arith.addf %8, %10 : vector<8x384xf32>
    %12 = vector.extract_strided_slice %11 {offsets = [0, 0], sizes = [8, 128], strides = [1, 1]} : vector<8x384xf32> to vector<8x128xf32>
    %13 = math.tanh %12 : vector<8x128xf32>
    %14 = vector.extract_strided_slice %11 {offsets = [0, 128], sizes = [8, 128], strides = [1, 1]} : vector<8x384xf32> to vector<8x128xf32>
    %15 = arith.negf %14 : vector<8x128xf32>
    %16 = math.exp %15 : vector<8x128xf32>
    %cst_12 = arith.constant 1.000000e+00 : f32
    %17 = vector.broadcast %cst_12 : f32 to vector<8x128xf32>
    %18 = arith.addf %17, %16 : vector<8x128xf32>
    %19 = arith.divf %17, %18 : vector<8x128xf32>
    %20 = vector.extract_strided_slice %11 {offsets = [0, 256], sizes = [8, 128], strides = [1, 1]} : vector<8x384xf32> to vector<8x128xf32>
    %21 = arith.negf %20 : vector<8x128xf32>
    %22 = math.exp %21 : vector<8x128xf32>
    %cst_13 = arith.constant 1.000000e+00 : f32
    %23 = vector.broadcast %cst_13 : f32 to vector<8x128xf32>
    %24 = arith.addf %23, %22 : vector<8x128xf32>
    %25 = arith.divf %23, %24 : vector<8x128xf32>
    %26 = vector.extract_strided_slice %13 {offsets = [0, 0], sizes = [8, 96], strides = [1, 1]} : vector<8x128xf32> to vector<8x96xf32>
    %27 = vector.extract_strided_slice %19 {offsets = [0, 0], sizes = [8, 96], strides = [1, 1]} : vector<8x128xf32> to vector<8x96xf32>
    %28 = vector.extract_strided_slice %25 {offsets = [0, 0], sizes = [8, 96], strides = [1, 1]} : vector<8x128xf32> to vector<8x96xf32>
    %29 = arith.mulf %26, %27 : vector<8x96xf32>
    %30 = arith.mulf %0, %28 : vector<8x96xf32>
    %31 = arith.addf %29, %30 : vector<8x96xf32>
    %c0_14 = arith.constant 0 : index
    %c0_15 = arith.constant 0 : index
    %32 = vector.load %arg7[%c0_14, %c0_15] : memref<8x96xf32, #tpu.memory_space<vmem>>, vector<8x96xf32>
    tpu.vector_store %arg7[%c0_14, %c0_15], %31 {strides = array<i32>} : memref<8x96xf32, #tpu.memory_space<vmem>>, vector<8x96xf32>,
    return
  }
  func.func @transform_0(%arg0: i32) -> (i32, i32) {
    %c0_i32 = arith.constant 0 : i32
    %c0_i32_0 = arith.constant 0 : i32
    return %arg0, %c0_i32 : i32, i32
  }
  func.func @transform_1(%arg0: i32) -> (i32, i32) {
    %c0_i32 = arith.constant 0 : i32
    %c0_i32_0 = arith.constant 0 : i32
    return %arg0, %c0_i32 : i32, i32
  }
  func.func @transform_2(%arg0: i32) -> (i32, i32) {
    %c0_i32 = arith.constant 0 : i32
    %c0_i32_0 = arith.constant 0 : i32
    return %arg0, %c0_i32 : i32, i32
  }
  func.func @transform_3(%arg0: i32) -> (i32, i32) {
    %c0_i32 = arith.constant 0 : i32
    %c0_i32_0 = arith.constant 0 : i32
    %c0_i32_1 = arith.constant 0 : i32
    return %c0_i32, %c0_i32_0 : i32, i32
  }
  func.func @transform_4(%arg0: i32) -> (i32, i32) {
    %c0_i32 = arith.constant 0 : i32
    %c0_i32_0 = arith.constant 0 : i32
    %c0_i32_1 = arith.constant 0 : i32
    return %c0_i32, %c0_i32_0 : i32, i32
  }
  func.func @transform_5(%arg0: i32) -> (i32, i32) {
    %c0_i32 = arith.constant 0 : i32
    %c0_i32_0 = arith.constant 0 : i32
    %c0_i32_1 = arith.constant 0 : i32
    return %c0_i32, %c0_i32_0 : i32, i32
  }
  func.func @transform_6(%arg0: i32) -> (i32, i32) {
    %c0_i32 = arith.constant 0 : i32
    %c0_i32_0 = arith.constant 0 : i32
    return %arg0, %c0_i32 : i32, i32
  }
}

module attributes {stable_mosaic.version = 11 : i64} {
  func.func @_highway_kernel(%arg0: i32, %arg1: memref<8x96xf32, #tpu.memory_space<vmem>>, %arg2: memref<8x96xf32, #tpu.memory_space<vmem>>, %arg3: memref<8x96xf32, #tpu.memory_space<vmem>>, %arg4: memref<96x384xf32, #tpu.memory_space<vmem>>, %arg5: memref<96x384xf32, #tpu.memory_space<vmem>>, %arg6: memref<1x384xf32, #tpu.memory_space<vmem>>, %arg7: memref<8x96xf32, #tpu.memory_space<vmem>>) attributes {dimension_semantics = [#tpu.dimension_semantics<parallel>], iteration_bounds = array<i64: 1>, scalar_prefetch = 0 : i64, scratch_operands = 0 : i64, tpu.core_type = #tpu.core_type<tc>, window_params = [{transform_indices = @transform_0, window_bounds = array<i64: 8, 96>}, {transform_indices = @transform_1, window_bounds = array<i64: 8, 96>}, {transform_indices = @transform_2, window_bounds = array<i64: 8, 96>}, {pipeline_mode = #tpu.pipeline_mode<synchronous>, transform_indices = @transform_3, window_bounds = array<i64: 96, 384>}, {pipeline_mode = #tpu.pipeline_mode<synchronous>, transform_indices = @transform_4, window_bounds = array<i64: 96, 384>}, {pipeline_mode = #tpu.pipeline_mode<synchronous>, transform_indices = @transform_5, window_bounds = array<i64: 1, 384>}, {transform_indices = @transform_6, window_bounds = array<i64: 8, 96>}]} {
    %c0 = arith.constant 0 : index
    %c0_0 = arith.constant 0 : index
    %0 = vector.load %arg2[%c0, %c0_0] : memref<8x96xf32, #tpu.memory_space<vmem>>, vector<8x96xf32>
    %c0_1 = arith.constant 0 : index
    %c0_2 = arith.constant 0 : index
    %1 = vector.load %arg3[%c0_1, %c0_2] : memref<8x96xf32, #tpu.memory_space<vmem>>, vector<8x96xf32>
    %2 = arith.mulf %0, %1 : vector<8x96xf32>
    %c0_3 = arith.constant 0 : index
    %c0_4 = arith.constant 0 : index
    %3 = vector.load %arg5[%c0_3, %c0_4] : memref<96x384xf32, #tpu.memory_space<vmem>>, vector<96x384xf32>
    %cst = arith.constant dense<0.000000e+00> : vector<8x384xf32>
    %4 = tpu.matmul %2, %3, %cst {dimension_numbers = #tpu.dot_dimension_numbers<[1], [0], [0], [1], [0, 0, 1, 1], [], []>} : vector<8x96xf32>, vector<96x384xf32>, vector<8x384xf32> -> vector<8x384xf32>
    %c0_5 = arith.constant 0 : index
    %c0_6 = arith.constant 0 : index
    %5 = vector.load %arg1[%c0_5, %c0_6] : memref<8x96xf32, #tpu.memory_space<vmem>>, vector<8x96xf32>
    %c0_7 = arith.constant 0 : index
    %c0_8 = arith.constant 0 : index
    %6 = vector.load %arg4[%c0_7, %c0_8] : memref<96x384xf32, #tpu.memory_space<vmem>>, vector<96x384xf32>
    %cst_9 = arith.constant dense<0.000000e+00> : vector<8x384xf32>
    %7 = tpu.matmul %5, %6, %cst_9 {dimension_numbers = #tpu.dot_dimension_numbers<[1], [0], [0], [1], [0, 0, 1, 1], [], []>} : vector<8x96xf32>, vector<96x384xf32>, vector<8x384xf32> -> vector<8x384xf32>
    %8 = arith.addf %4, %7 : vector<8x384xf32>
    %c0_10 = arith.constant 0 : index
    %c0_11 = arith.constant 0 : index
    %9 = vector.load %arg6[%c0_10, %c0_11] : memref<1x384xf32, #tpu.memory_space<vmem>>, vector<1x384xf32>
    %10 = vector.broadcast %9 : vector<1x384xf32> to vector<8x384xf32>
    %11 = arith.addf %8, %10 : vector<8x384xf32>
    %12 = vector.extract_strided_slice %11 {offsets = [0, 0], sizes = [8, 128], strides = [1, 1]} : vector<8x384xf32> to vector<8x128xf32>
    %13 = math.tanh %12 : vector<8x128xf32>
    %14 = vector.extract_strided_slice %11 {offsets = [0, 128], sizes = [8, 128], strides = [1, 1]} : vector<8x384xf32> to vector<8x128xf32>
    %15 = arith.negf %14 : vector<8x128xf32>
    %16 = math.exp %15 : vector<8x128xf32>
    %cst_12 = arith.constant 1.000000e+00 : f32
    %17 = vector.broadcast %cst_12 : f32 to vector<8x128xf32>
    %18 = arith.addf %17, %16 : vector<8x128xf32>
    %19 = arith.divf %17, %18 : vector<8x128xf32>
    %20 = vector.extract_strided_slice %11 {offsets = [0, 256], sizes = [8, 128], strides = [1, 1]} : vector<8x384xf32> to vector<8x128xf32>
    %21 = arith.negf %20 : vector<8x128xf32>
    %22 = math.exp %21 : vector<8x128xf32>
    %cst_13 = arith.constant 1.000000e+00 : f32
    %23 = vector.broadcast %cst_13 : f32 to vector<8x128xf32>
    %24 = arith.addf %23, %22 : vector<8x128xf32>
    %25 = arith.divf %23, %24 : vector<8x128xf32>
    %26 = vector.extract_strided_slice %13 {offsets = [0, 0], sizes = [8, 96], strides = [1, 1]} : vector<8x128xf32> to vector<8x96xf32>
    %27 = vector.extract_strided_slice %19 {offsets = [0, 0], sizes = [8, 96], strides = [1, 1]} : vector<8x128xf32> to vector<8x96xf32>
    %28 = vector.extract_strided_slice %25 {offsets = [0, 0], sizes = [8, 96], strides = [1, 1]} : vector<8x128xf32> to vector<8x96xf32>
    %29 = arith.mulf %26, %27 : vector<8x96xf32>
    %30 = arith.mulf %0, %28 : vector<8x96xf32>
    %31 = arith.addf %29, %30 : vector<8x96xf32>
    %c0_14 = arith.constant 0 : index
    %c0_15 = arith.constant 0 : index
    %32 = vector.load %arg7[%c0_14, %c0_15] : memref<8x96xf32, #tpu.memory_space<vmem>>, vector<8x96xf32>
    tpu.vector_store %arg7[%c0_14, %c0_15], %31 {strides = array<i32>} : memref<8x96xf32, #tpu.memory_space<vmem>>, vector<8x96xf32>,
    return
  }
  func.func @transform_0(%arg0: i32) -> (i32, i32) {
    %c0_i32 = arith.constant 0 : i32
    %c0_i32_0 = arith.constant 0 : i32
    return %arg0, %c0_i32 : i32, i32
  }
  func.func @transform_1(%arg0: i32) -> (i32, i32) {
    %c0_i32 = arith.constant 0 : i32
    %c0_i32_0 = arith.constant 0 : i32
    return %arg0, %c0_i32 : i32, i32
  }
  func.func @transform_2(%arg0: i32) -> (i32, i32) {
    %c0_i32 = arith.constant 0 : i32
    %c0_i32_0 = arith.constant 0 : i32
    return %arg0, %c0_i32 : i32, i32
  }
  func.func @transform_3(%arg0: i32) -> (i32, i32) {
    %c0_i32 = arith.constant 0 : i32
    %c0_i32_0 = arith.constant 0 : i32
    %c0_i32_1 = arith.constant 0 : i32
    return %c0_i32, %c0_i32_0 : i32, i32
  }
  func.func @transform_4(%arg0: i32) -> (i32, i32) {
    %c0_i32 = arith.constant 0 : i32
    %c0_i32_0 = arith.constant 0 : i32
    %c0_i32_1 = arith.constant 0 : i32
    return %c0_i32, %c0_i32_0 : i32, i32
  }
  func.func @transform_5(%arg0: i32) -> (i32, i32) {
    %c0_i32 = arith.constant 0 : i32
    %c0_i32_0 = arith.constant 0 : i32
    %c0_i32_1 = arith.constant 0 : i32
    return %c0_i32, %c0_i32_0 : i32, i32
  }
  func.func @transform_6(%arg0: i32) -> (i32, i32) {
    %c0_i32 = arith.constant 0 : i32
    %c0_i32_0 = arith.constant 0 : i32
    return %arg0, %c0_i32 : i32, i32
  }
}

</mosaic_0001>

<bundles_post_ra>
// kernel: tpu_custom_call.1
= control target key start
LH: loop header
LB: loop body
LE: loop exit
PB: predicated region body
PF: predicated region fallthrough
CT: control target
= control target key end

     0   :  { %11 = vsyncpa [#allocation3], 0  ;;  %s625_s0 = inlined_call_operand.hbm [shape: f32[8,96], index: 0, kind: input, shape index: {}]   ;;  %s626_s1 = inlined_call_operand.hbm [shape: f32[8,96], index: 1, kind: input, shape index: {}]   ;;  %s627_s2 = inlined_call_operand.hbm [shape: f32[8,96], index: 2, kind: input, shape index: {}]   ;;  %s628_s3 = inlined_call_operand.hbm [shape: f32[96,384], index: 3, kind: input, shape index: {}]   ;;  %s629_s4 = inlined_call_operand.hbm [shape: f32[96,384], index: 4, kind: input, shape index: {}]   ;;  %s630_s5 = inlined_call_operand.vmem [shape: f32[1,384], index: 5, kind: input, shape index: {}]   ;;  %s631_s6 = inlined_call_operand.hbm [shape: f32[8,96], index: 6, kind: output, shape index: {}]  }
   0x1   :  { %12 = vsyncpa [#allocation6], 0 }
   0x2   :  { %13 = vsyncpa [#allocation9], 0  ;;  %s31_s23 = sshll.u32 %s626_s1, 4  ;;  %s32_s23 = int_to_ptr.hbm [resolvable:$true] %s31_s23 }
   0x3   :  { %14 = vsyncpa [#allocation4], 0  ;;  %s550_s24 = smov [#allocation5]   ;;  %s52_s28 = sshll.u32 %s628_s3, 4  ;;  %s53_s28 = int_to_ptr.hbm [resolvable:$true] %s52_s28 }
   0x4   :  { %s33_s25 = sshll.u32 %s550_s24, 4  ;;  %s551_s29 = smov [#allocation8]   ;;  %s34_s25 = int_to_ptr.vmem [resolvable:$true] %s33_s25 }
   0x5   :  { %36 = dma.hbm_to_vmem [thread:$0]  %s32_s23, 128, %s34_s25, [#allocation6]  }
   0x6   :  { %s54_s30 = sshll.u32 %s551_s29, 4  ;;  %s552_s7 = smov 384   ;;  %s55_s30 = int_to_ptr.vmem [resolvable:$true] %s54_s30 }
   0x7   :  { %s553_s8 = smov 24   ;;  %s20_s1 = sshll.u32 %s625_s0, 4  ;;  %s21_s1 = int_to_ptr.hbm [resolvable:$true] %s20_s1 }
   0x8   :  { %60 = dma.hbm_to_vmem [thread:$0]  %s53_s28, 4608, %s55_s30, [#allocation9], %s552_s7, %s552_s7, %s553_s8  }
   0x9   :  { %s554_s11 = smov [#allocation2]   ;;  %s42_s3 = sshll.u32 %s627_s2, 4  ;;  %s43_s3 = int_to_ptr.hbm [resolvable:$true] %s42_s3 }
   0xa   :  { %s22_s12 = sshll.u32 %s554_s11, 4  ;;  %s555_s15 = smov [#allocation7]   ;;  %s23_s12 = int_to_ptr.vmem [resolvable:$true] %s22_s12 }
   0xb   :  { %25 = dma.hbm_to_vmem [thread:$0]  %s21_s1, 128, %s23_s12, [#allocation3]  }
   0xc   :  { %s44_s16 = sshll.u32 %s555_s15, 4  ;;  %s65_s19 = sshll.u32 %s629_s4, 4  ;;  %s45_s16 = int_to_ptr.vmem [resolvable:$true] %s44_s16  ;;  %s66_s19 = int_to_ptr.hbm [resolvable:$true] %s65_s19 }
   0xd   :  { %47 = dma.hbm_to_vmem [thread:$0]  %s43_s3, 128, %s45_s16, [#allocation6]  }
   0xe   :  { %s556_s0 = smov [#allocation10]  }
   0xf   :  { %s67_s20 = sshll.u32 %s556_s0, 4  ;;  %s68_s20 = int_to_ptr.vmem [resolvable:$true] %s67_s20 }
  0x10   :  { %73 = dma.hbm_to_vmem [thread:$0]  %s66_s19, 4608, %s68_s20, [#allocation9], %s552_s7, %s552_s7, %s553_s8  }
  0x11   :  { %542 = dma.done.wait [#allocation3], 128  }
  0x12   :  { %543 = vsyncadd [#allocation3], 4294967168 }
  0x13   :  { %544 = dma.done.wait [#allocation6], 256  }
  0x14   :  { %545 = vsyncadd [#allocation6], 4294967040 }
  0x15   :  { %546 = dma.done.wait [#allocation9], 9216  }
  0x16   :  { %547 = vsyncadd [#allocation9], 4294958080  ;;  %v169_v0 = vld [vmem:[#allocation8 + $0x108] sm:$0xff]  ;;  %v170_v1 = vld [vmem:[#allocation8 + $0x110] sm:$0xff]  ;;  %vm172_vm0 = vcmask 785408   ;;  %s360_s24 = sshll.u32 %s631_s6, 4  ;;  %s361_s24 = int_to_ptr.hbm [resolvable:$true] %s360_s24 }
  0x17   :  { %v166_v2 = vld [vmem:[#allocation8 + $0xf0] sm:$0xff]  ;;  %180 = vmatpush.msra.mxu0 %v169_v0  ;;  %200 = vmatpush.msra.mxu1 %v170_v1  ;;  %v167_v3 = vld [vmem:[#allocation8 + $0xf8] sm:$0xff]  ;;  %v164_v5 = vld [vmem:[#allocation8 + $0xe0] sm:$0xff] }
  0x18   :  { %v163_v4 = vld [vmem:[#allocation8 + $0xd8] sm:$0xff]  ;;  %v132_v6 = vld [vmem:[#allocation10 + $0x108] sm:$0xff]  ;;  %v160_v7 = vld [vmem:[#allocation8 + $0xc0] sm:$0xff] }
  0x19   :  { %181 = vmatpush.msra.mxu0 %v166_v2  ;;  %201 = vmatpush.msra.mxu1 %v167_v3  ;;  %v161_v8 = vld [vmem:[#allocation8 + $0xc8] sm:$0xff]  ;;  %v129_v9 = vld [vmem:[#allocation10 + $0xf0] sm:$0xff]  ;;  %v126_v10 = vld [vmem:[#allocation10 + $0xd8] sm:$0xff] }
  0x1a   :  { %243 = vmatpush.msra.mxu3 %v132_v6  ;;  %v157_v11 = vld [vmem:[#allocation8 + $0xa8] sm:$0xff]  ;;  %v158_v12 = vld [vmem:[#allocation8 + $0xb0] sm:$0xff]  ;;  %v123_v13 = vld [vmem:[#allocation10 + $0xc0] sm:$0xff] }
  0x1b   :  { %182 = vmatpush.msra.mxu0 %v163_v4  ;;  %202 = vmatpush.msra.mxu1 %v164_v5  ;;  %v171_v14 = vld [vmem:[#allocation8 + $0x118] sm:$0xff]  ;;  %v154_v15 = vld [vmem:[#allocation8 + $0x90] sm:$0xff]  ;;  %v168_v17 = vld [vmem:[#allocation8 + $0x100] sm:$0xff] }
  0x1c   :  { %244 = vmatpush.msra.mxu3 %v129_v9  ;;  %v155_v16 = vld [vmem:[#allocation8 + $0x98] sm:$0xff]  ;;  %220 = vmatpush.msra.mxu2 %v171_v14  ;;  %v120_v18 = vld [vmem:[#allocation10 + $0xa8] sm:$0xff]  ;;  %v152_v20 = vld [vmem:[#allocation8 + $0x80] sm:$0xff] }
  0x1d   :  { %183 = vmatpush.msra.mxu0 %v160_v7  ;;  %203 = vmatpush.msra.mxu1 %v161_v8  ;;  %v151_v19 = vld [vmem:[#allocation8 + $0x78] sm:$0xff]  ;;  %v165_v21 = vld [vmem:[#allocation8 + $0xe8] sm:$0xff]  ;;  %v117_v22 = vld [vmem:[#allocation10 + $0x90] sm:$0xff] }
  0x1e   :  { %245 = vmatpush.msra.mxu3 %v126_v10  ;;  %221 = vmatpush.msra.mxu2 %v168_v17  ;;  %v162_v23 = vld [vmem:[#allocation8 + $0xd0] sm:$0xff]  ;;  %v148_v24 = vld [vmem:[#allocation8 + $0x60] sm:$0xff]  ;;  %v149_v25 = vld [vmem:[#allocation8 + $0x68] sm:$0xff] }
  0x1f   :  { %184 = vmatpush.msra.mxu0 %v157_v11  ;;  %204 = vmatpush.msra.mxu1 %v158_v12  ;;  %v114_v26 = vld [vmem:[#allocation10 + $0x78] sm:$0xff]  ;;  %v145_v28 = vld [vmem:[#allocation8 + $0x48] sm:$0xff]  ;;  %v146_v29 = vld [vmem:[#allocation8 + $0x50] sm:$0xff] }
  0x20   :  { %246 = vmatpush.msra.mxu3 %v123_v13  ;;  %222 = vmatpush.msra.mxu2 %v165_v21  ;;  %v159_v27 = vld [vmem:[#allocation8 + $0xb8] sm:$0xff]  ;;  %v111_v30 = vld [vmem:[#allocation10 + $0x60] sm:$0xff]  ;;  %v142_v32 = vld [vmem:[#allocation8 + $0x30] sm:$0xff] }
  0x21   :  { %185 = vmatpush.msra.mxu0 %v154_v15  ;;  %205 = vmatpush.msra.mxu1 %v155_v16  ;;  %v156_v31 = vld [vmem:[#allocation8 + $0xa0] sm:$0xff]  ;;  %v143_v33 = vld [vmem:[#allocation8 + $0x38] sm:$0xff]  ;;  %v108_v34 = vld [vmem:[#allocation10 + $0x48] sm:$0xff] }
  0x22   :  { %247 = vmatpush.msra.mxu3 %v120_v18  ;;  %223 = vmatpush.msra.mxu2 %v162_v23  ;;  %v153_v35 = vld [vmem:[#allocation8 + $0x88] sm:$0xff]  ;;  %v139_v36 = vld [vmem:[#allocation8 + $0x18] sm:$0xff]  ;;  %v140_v37 = vld [vmem:[#allocation8 + $0x20] sm:$0xff] }
  0x23   :  { %186 = vmatpush.msra.mxu0 %v151_v19  ;;  %206 = vmatpush.msra.mxu1 %v152_v20  ;;  %v105_v38 = vld [vmem:[#allocation10 + $0x30] sm:$0xff]  ;;  %v136_v40 = vld [vmem:[#allocation8] sm:$0xff]  ;;  %v137_v41 = vld [vmem:[#allocation8 + $0x8] sm:$0xff] }
  0x24   :  { %248 = vmatpush.msra.mxu3 %v117_v22  ;;  %224 = vmatpush.msra.mxu2 %v159_v27  ;;  %v150_v39 = vld [vmem:[#allocation8 + $0x70] sm:$0xff]  ;;  %v134_v43 = vld [vmem:[#allocation10 + $0x118] sm:$0xff]  ;;  %v131_v49 = vld [vmem:[#allocation10 + $0x100] sm:$0xff] }
  0x25   :  { %187 = vmatpush.msra.mxu0 %v148_v24  ;;  %207 = vmatpush.msra.mxu1 %v149_v25  ;;  %v133_v42 = vld [vmem:[#allocation10 + $0x110] sm:$0xff]  ;;  %v102_v44 = vld [vmem:[#allocation10 + $0x18] sm:$0xff]  ;;  %v99_v50 = vld [vmem:[#allocation10] sm:$0xff] }
  0x26   :  { %249 = vmatpush.msra.mxu3 %v114_v26  ;;  %225 = vmatpush.msra.mxu2 %v156_v31  ;;  %v608_v45 = vld [vmem:[#allocation5] sm:$0xff]  ;;  %v97_v46 = vld [vmem:[#allocation7] sm:$0xff]  ;;  %v144_v51 = vld [vmem:[#allocation8 + $0x40] sm:$0xff] }
  0x27   :  { %188 = vmatpush.msra.mxu0 %v145_v28  ;;  %208 = vmatpush.msra.mxu1 %v146_v29  ;;  %v147_v47 = vld [vmem:[#allocation8 + $0x58] sm:$0xff]  ;;  %v127_v52 = vld [vmem:[#allocation10 + $0xe0] sm:$0xff]  ;;  %v128_v53 = vld [vmem:[#allocation10 + $0xe8] sm:$0xff]  ;;  %v98_v54 = vmul.f32 %v97_v46, %v608_v45 }
  0x28   :  { %250 = vmatpush.msra.mxu3 %v111_v30  ;;  %226 = vmatpush.msra.mxu2 %v153_v35  ;;  %v130_v48 = vld [vmem:[#allocation10 + $0xf8] sm:$0xff]  ;;  %v141_v55 = vld [vmem:[#allocation8 + $0x28] sm:$0xff]  ;;  %v125_v57 = vld [vmem:[#allocation10 + $0xd0] sm:$0xff] }
  0x29   :  { %189 = vmatpush.msra.mxu0 %v142_v32  ;;  %209 = vmatpush.msra.mxu1 %v143_v33  ;;  %v124_v56 = vld [vmem:[#allocation10 + $0xc8] sm:$0xff]  ;;  %v121_v59 = vld [vmem:[#allocation10 + $0xb0] sm:$0xff]  ;;  %v122_v60 = vld [vmem:[#allocation10 + $0xb8] sm:$0xff] }
  0x2a   :  { %251 = vmatpush.msra.mxu3 %v108_v34  ;;  %227 = vmatpush.msra.mxu2 %v150_v39  ;;  %v135_v58 = vld [vmem:[#allocation2] sm:$0xff]  ;;  %v138_v61 = vld [vmem:[#allocation8 + $0x10] sm:$0xff]  ;;  %v118_v62 = vld [vmem:[#allocation10 + $0x98] sm:$0xff] }
  0x2b   :  { %190 = vmatpush.msra.mxu0 %v139_v36  ;;  %210 = vmatpush.msra.mxu1 %v140_v37  ;;  %v119_v63 = vld [vmem:[#allocation10 + $0xa0] sm:$0xff]  ;;  %v116_v1 = vld [vmem:[#allocation10 + $0x88] sm:$0xff]  ;;  %v113_v3 = vld [vmem:[#allocation10 + $0x70] sm:$0xff] }
  0x2c   :  { %252 = vmatpush.msra.mxu3 %v105_v38  ;;  %228 = vmatpush.msra.mxu2 %v147_v47  ;;  %v115_v0 = vld [vmem:[#allocation10 + $0x80] sm:$0xff]  ;;  %v112_v2 = vld [vmem:[#allocation10 + $0x68] sm:$0xff]  ;;  %v109_v4 = vld [vmem:[#allocation10 + $0x50] sm:$0xff] }
  0x2d   :  { %191 = vmatpush.msra.mxu0 %v136_v40  ;;  %211 = vmatpush.msra.mxu1 %v137_v41  ;;  %v110_v5 = vld [vmem:[#allocation10 + $0x58] sm:$0xff]  ;;  %v107_v7 = vld [vmem:[#allocation10 + $0x40] sm:$0xff]  ;;  %v104_v9 = vld [vmem:[#allocation10 + $0x28] sm:$0xff] }
  0x2e   :  { %253 = vmatpush.msra.mxu3 %v102_v44  ;;  %229 = vmatpush.msra.mxu2 %v144_v51  ;;  %v106_v6 = vld [vmem:[#allocation10 + $0x38] sm:$0xff]  ;;  %v103_v8 = vld [vmem:[#allocation10 + $0x20] sm:$0xff]  ;;  %v100_v10 = vld [vmem:[#allocation10 + $0x8] sm:$0xff] }
  0x2f   :  { %263 = vmatpush.msrb.mxu0 %v133_v42  ;;  %283 = vmatpush.msrb.mxu1 %v134_v43  ;;  %v101_v11 = vld [vmem:[#allocation10 + $0x10] sm:$0xff]  ;;  %v299_v14 = vld [vmem:[%s630_s5] sm:$0x7]  ;;  %s557_s5 = smov [#allocation11]  }
  0x30   :  { %254 = vmatpush.msra.mxu3 %v99_v50  ;;  %230 = vmatpush.msra.mxu2 %v141_v55  ;;  %v302_v16 = vperm.slane %v299_v14, 1  ;;  %v303_v17 = vperm.slane %v299_v14, 2  ;;  %v301_v32 = vperm.slane %v299_v14, 0  ;;  %s358_s21 = sshll.u32 %s557_s5, 4  ;;  %s359_s21 = int_to_ptr.vmem [resolvable:$true] %s358_s21 }
  0x31   :  { %264 = vmatpush.msrb.mxu0 %v130_v48  ;;  %284 = vmatpush.msrb.mxu1 %v131_v49 }
  0x32   :  { %375 = vmatmul.msk.f32.vlgmr.msra.gmra.mxu3 %vm172_vm0, %v98_v54  ;;  %372 = vmatmul.msk.f32.vlgmr.msra.gmra.mxu0 %vm172_vm0, %v135_v58 }
  0x33   :  { %265 = vmatpush.msrb.mxu0 %v127_v52  ;;  %285 = vmatpush.msrb.mxu1 %v128_v53 }
  0x34   :  { %373 = vmatmul.msk.f32.vlgmr.msra.gmra.mxu1 %vm172_vm0, %v135_v58  ;;  %231 = vmatpush.msra.mxu2 %v138_v61 }
  0x35   :  { %266 = vmatpush.msrb.mxu0 %v124_v56  ;;  %286 = vmatpush.msrb.mxu1 %v125_v57 }
  0x36   :  { %374 = vmatmul.msk.f32.vlgmr.msra.gmra.mxu2 %vm172_vm0, %v135_v58 }
  0x37   :  { %267 = vmatpush.msrb.mxu0 %v121_v59  ;;  %287 = vmatpush.msrb.mxu1 %v122_v60 }
  0x39   :  { %268 = vmatpush.msrb.mxu0 %v118_v62  ;;  %288 = vmatpush.msrb.mxu1 %v119_v63 }
  0x3b   :  { %269 = vmatpush.msrb.mxu0 %v115_v0  ;;  %289 = vmatpush.msrb.mxu1 %v116_v1 }
  0x3d   :  { %270 = vmatpush.msrb.mxu0 %v112_v2  ;;  %290 = vmatpush.msrb.mxu1 %v113_v3 }
  0x3f   :  { %271 = vmatpush.msrb.mxu0 %v109_v4  ;;  %291 = vmatpush.msrb.mxu1 %v110_v5 }
  0x41   :  { %272 = vmatpush.msrb.mxu0 %v106_v6  ;;  %292 = vmatpush.msrb.mxu1 %v107_v7 }
  0x43   :  { %273 = vmatpush.msrb.mxu0 %v103_v8  ;;  %293 = vmatpush.msrb.mxu1 %v104_v9 }
  0x45   :  { %274 = vmatpush.msrb.mxu0 %v100_v10  ;;  %294 = vmatpush.msrb.mxu1 %v101_v11 }
  0x46   :  { %376 = vmatmul.msk.f32.vlgmr.msrb.gmra.mxu0 %vm172_vm0, %v98_v54  ;;  %377 = vmatmul.msk.f32.vlgmr.msrb.gmra.mxu1 %vm172_vm0, %v98_v54 }
  0xaf   :  { %v193_v12 = vpop.f32.mrf.mxu0 }
  0xb1   :  { %v213_v13 = vpop.f32.mrf.mxu1 }
  0xb5   :  { %v256_v29 = vpop.f32.mrf.mxu3 }
  0xb6   :  { %v257_v31 = vadd.f32 %v256_v29, %v193_v12 }
  0xb8   :  { %v307_v34 = vadd.f32 %v301_v32, %v257_v31 }
  0xb9   :  { %v233_v15 = vpop.f32.mrf.mxu2 }
  0xc3   :  { %v276_v18 = vpop.f32.mrf.mxu0  ;;  %v296_v19 = vpop.f32.mrf.mxu1 }
  0xc4   :  { %v277_v20 = vadd.f32 %v276_v18, %v213_v13  ;;  %v297_v21 = vadd.f32 %v296_v19, %v233_v15 }
  0xc6   :  { %v308_v22 = vadd.f32 %v302_v16, %v277_v20  ;;  %v309_v23 = vadd.f32 %v303_v17, %v297_v21 }
  0xc8   :  { %v378_v24 = vmul.f32 -1.442695, %v308_v22  ;;  %v379_v25 = vmul.f32 -1.442695, %v309_v23 }
  0xca   :  { %388 = vpow2.f32 %v378_v24 }
  0xcb   :  { %390 = vpow2.f32 %v379_v25 }
  0xd0   :  { %v389_v26 = vpop.eup %388 }
  0xd1   :  { %v391_v27 = vpop.eup %390  ;;  %v314_v28 = vadd.f32 1.0, %v389_v26 }
  0xd2   :  { %v333_v30 = vadd.f32 1.0, %v391_v27 }
  0xd3   :  { %392 = vrcp.f32 %v314_v28  ;;  %v326_v40 = vand.u32 2147483648, %v314_v28  ;;  %v324_v42 = vand.u32 2147483647, %v314_v28  ;;  %vm320_vm3 = vweird.f32 %v314_v28 }
  0xd4   :  { %394 = vrcp.f32 %v333_v30  ;;  %v345_v43 = vand.u32 2147483648, %v333_v30  ;;  %v343_v46 = vand.u32 2147483647, %v333_v30  ;;  %vm339_vm5 = vweird.f32 %v333_v30 }
  0xd5   :  { %396 = vtanh.f32 %v307_v34  ;;  %v327_v48 = vor.u32 1.1754944e-38, %v326_v40  ;;  %vm325_vm6 = vcmp.eq.f32.partialorder %v324_v42, 8.507059e+37 }
  0xd6   :  { %v346_v51 = vor.u32 1.1754944e-38, %v345_v43  ;;  %vm344_vm8 = vcmp.eq.f32.partialorder %v343_v46, 8.507059e+37 }
  0xd9   :  { %v393_v33 = vpop.eup %392 }
  0xda   :  { %v395_v35 = vpop.eup %394  ;;  %v316_v36 = vmul.f32 %v393_v33, %v314_v28  ;;  %vm321_vm1 = vweird.f32 %v393_v33 }
  0xdb   :  { %v335_v37 = vmul.f32 %v395_v35, %v333_v30  ;;  %vm340_vm2 = vweird.f32 %v395_v35  ;;  %vm322_vm4 = vmor %vm320_vm3, %vm321_vm1  ;;  %v397_v52 = vpop.eup %396 }
  0xdc   :  { %v317_v38 = vsub.f32 1.0, %v316_v36  ;;  %vm341_vm7 = vmor %vm339_vm5, %vm340_vm2 }
  0xdd   :  { %v336_v39 = vsub.f32 1.0, %v335_v37 }
  0xde   :  { %v318_v41 = vmul.f32 %v393_v33, %v317_v38 }
  0xdf   :  { %v337_v44 = vmul.f32 %v395_v35, %v336_v39 }
  0xe0   :  { %v319_v47 = vadd.f32 %v393_v33, %v318_v41 }
  0xe1   :  { %v338_v49 = vadd.f32 %v395_v35, %v337_v44 }
  0xe2   :  { %v323_v50 = vsel %vm322_vm4, %v393_v33, %v319_v47 }
  0xe3   :  { %v328_v53 = vsel %vm325_vm6, %v327_v48, %v323_v50  ;;  %v342_v54 = vsel %vm341_vm7, %v395_v35, %v338_v49 }
  0xe4   :  { %v347_v55 = vsel %vm344_vm8, %v346_v51, %v342_v54  ;;  %v349_v56 = vmul.f32 %v397_v52, %v328_v53 }
  0xe5   :  { %v350_v57 = vmul.f32 %v347_v55, %v608_v45 }
  0xe7   :  { %v351_v58 = vadd.f32 %v350_v57, %v349_v56 }
  0xe9   :  { %352 = vst.msk [vmem:[#allocation11] sm:$0xff] %vm172_vm0, %v351_v58 }
  0xea   :  { %363 = dma.vmem_to_hbm [thread:$0]  %s359_s21, 128, %s361_s24, [#allocation4]  }
  0xeb   :  { %548 = dma.done.wait [#allocation4], 128  }
  0xec   :  { %549 = vsyncadd [#allocation4], 4294967168 }
  0xed   :  { %368 = vsyncpa [#allocation3], 1 }
  0xee   :  { %369 = vsyncpa [#allocation6], 1 }
  0xef   :  { %370 = vsyncpa [#allocation9], 1 }
  0xf0   :  { %371 = vsyncpa [#allocation4], 1 }

// kernel: tpu_custom_call.1
= control target key start
LH: loop header
LB: loop body
LE: loop exit
PB: predicated region body
PF: predicated region fallthrough
CT: control target
= control target key end

     0   :  { %11 = vsyncpa [#allocation3], 0  ;;  %s625_s0 = inlined_call_operand.hbm [shape: f32[8,96], index: 0, kind: input, shape index: {}]   ;;  %s626_s1 = inlined_call_operand.hbm [shape: f32[8,96], index: 1, kind: input, shape index: {}]   ;;  %s627_s2 = inlined_call_operand.hbm [shape: f32[8,96], index: 2, kind: input, shape index: {}]   ;;  %s628_s3 = inlined_call_operand.hbm [shape: f32[96,384], index: 3, kind: input, shape index: {}]   ;;  %s629_s4 = inlined_call_operand.hbm [shape: f32[96,384], index: 4, kind: input, shape index: {}]   ;;  %s630_s5 = inlined_call_operand.vmem [shape: f32[1,384], index: 5, kind: input, shape index: {}]   ;;  %s631_s6 = inlined_call_operand.hbm [shape: f32[8,96], index: 6, kind: output, shape index: {}]  }
   0x1   :  { %12 = vsyncpa [#allocation6], 0 }
   0x2   :  { %13 = vsyncpa [#allocation9], 0  ;;  %s31_s23 = sshll.u32 %s626_s1, 4  ;;  %s32_s23 = int_to_ptr.hbm [resolvable:$true] %s31_s23 }
   0x3   :  { %14 = vsyncpa [#allocation4], 0  ;;  %s550_s24 = smov [#allocation5]   ;;  %s52_s28 = sshll.u32 %s628_s3, 4  ;;  %s53_s28 = int_to_ptr.hbm [resolvable:$true] %s52_s28 }
   0x4   :  { %s33_s25 = sshll.u32 %s550_s24, 4  ;;  %s551_s29 = smov [#allocation8]   ;;  %s34_s25 = int_to_ptr.vmem [resolvable:$true] %s33_s25 }
   0x5   :  { %36 = dma.hbm_to_vmem [thread:$0]  %s32_s23, 128, %s34_s25, [#allocation6]  }
   0x6   :  { %s54_s30 = sshll.u32 %s551_s29, 4  ;;  %s552_s7 = smov 384   ;;  %s55_s30 = int_to_ptr.vmem [resolvable:$true] %s54_s30 }
   0x7   :  { %s553_s8 = smov 24   ;;  %s20_s1 = sshll.u32 %s625_s0, 4  ;;  %s21_s1 = int_to_ptr.hbm [resolvable:$true] %s20_s1 }
   0x8   :  { %60 = dma.hbm_to_vmem [thread:$0]  %s53_s28, 4608, %s55_s30, [#allocation9], %s552_s7, %s552_s7, %s553_s8  }
   0x9   :  { %s554_s11 = smov [#allocation2]   ;;  %s42_s3 = sshll.u32 %s627_s2, 4  ;;  %s43_s3 = int_to_ptr.hbm [resolvable:$true] %s42_s3 }
   0xa   :  { %s22_s12 = sshll.u32 %s554_s11, 4  ;;  %s555_s15 = smov [#allocation7]   ;;  %s23_s12 = int_to_ptr.vmem [resolvable:$true] %s22_s12 }
   0xb   :  { %25 = dma.hbm_to_vmem [thread:$0]  %s21_s1, 128, %s23_s12, [#allocation3]  }
   0xc   :  { %s44_s16 = sshll.u32 %s555_s15, 4  ;;  %s65_s19 = sshll.u32 %s629_s4, 4  ;;  %s45_s16 = int_to_ptr.vmem [resolvable:$true] %s44_s16  ;;  %s66_s19 = int_to_ptr.hbm [resolvable:$true] %s65_s19 }
   0xd   :  { %47 = dma.hbm_to_vmem [thread:$0]  %s43_s3, 128, %s45_s16, [#allocation6]  }
   0xe   :  { %s556_s0 = smov [#allocation10]  }
   0xf   :  { %s67_s20 = sshll.u32 %s556_s0, 4  ;;  %s68_s20 = int_to_ptr.vmem [resolvable:$true] %s67_s20 }
  0x10   :  { %73 = dma.hbm_to_vmem [thread:$0]  %s66_s19, 4608, %s68_s20, [#allocation9], %s552_s7, %s552_s7, %s553_s8  }
  0x11   :  { %542 = dma.done.wait [#allocation3], 128  }
  0x12   :  { %543 = vsyncadd [#allocation3], 4294967168 }
  0x13   :  { %544 = dma.done.wait [#allocation6], 256  }
  0x14   :  { %545 = vsyncadd [#allocation6], 4294967040 }
  0x15   :  { %546 = dma.done.wait [#allocation9], 9216  }
  0x16   :  { %547 = vsyncadd [#allocation9], 4294958080  ;;  %v169_v0 = vld [vmem:[#allocation8 + $0x108] sm:$0xff]  ;;  %v170_v1 = vld [vmem:[#allocation8 + $0x110] sm:$0xff]  ;;  %vm172_vm0 = vcmask 785408   ;;  %s360_s24 = sshll.u32 %s631_s6, 4  ;;  %s361_s24 = int_to_ptr.hbm [resolvable:$true] %s360_s24 }
  0x17   :  { %v166_v2 = vld [vmem:[#allocation8 + $0xf0] sm:$0xff]  ;;  %180 = vmatpush.msra.mxu0 %v169_v0  ;;  %200 = vmatpush.msra.mxu1 %v170_v1  ;;  %v167_v3 = vld [vmem:[#allocation8 + $0xf8] sm:$0xff]  ;;  %v164_v5 = vld [vmem:[#allocation8 + $0xe0] sm:$0xff] }
  0x18   :  { %v163_v4 = vld [vmem:[#allocation8 + $0xd8] sm:$0xff]  ;;  %v132_v6 = vld [vmem:[#allocation10 + $0x108] sm:$0xff]  ;;  %v160_v7 = vld [vmem:[#allocation8 + $0xc0] sm:$0xff] }
  0x19   :  { %181 = vmatpush.msra.mxu0 %v166_v2  ;;  %201 = vmatpush.msra.mxu1 %v167_v3  ;;  %v161_v8 = vld [vmem:[#allocation8 + $0xc8] sm:$0xff]  ;;  %v129_v9 = vld [vmem:[#allocation10 + $0xf0] sm:$0xff]  ;;  %v126_v10 = vld [vmem:[#allocation10 + $0xd8] sm:$0xff] }
  0x1a   :  { %243 = vmatpush.msra.mxu3 %v132_v6  ;;  %v157_v11 = vld [vmem:[#allocation8 + $0xa8] sm:$0xff]  ;;  %v158_v12 = vld [vmem:[#allocation8 + $0xb0] sm:$0xff]  ;;  %v123_v13 = vld [vmem:[#allocation10 + $0xc0] sm:$0xff] }
  0x1b   :  { %182 = vmatpush.msra.mxu0 %v163_v4  ;;  %202 = vmatpush.msra.mxu1 %v164_v5  ;;  %v171_v14 = vld [vmem:[#allocation8 + $0x118] sm:$0xff]  ;;  %v154_v15 = vld [vmem:[#allocation8 + $0x90] sm:$0xff]  ;;  %v168_v17 = vld [vmem:[#allocation8 + $0x100] sm:$0xff] }
  0x1c   :  { %244 = vmatpush.msra.mxu3 %v129_v9  ;;  %v155_v16 = vld [vmem:[#allocation8 + $0x98] sm:$0xff]  ;;  %220 = vmatpush.msra.mxu2 %v171_v14  ;;  %v120_v18 = vld [vmem:[#allocation10 + $0xa8] sm:$0xff]  ;;  %v152_v20 = vld [vmem:[#allocation8 + $0x80] sm:$0xff] }
  0x1d   :  { %183 = vmatpush.msra.mxu0 %v160_v7  ;;  %203 = vmatpush.msra.mxu1 %v161_v8  ;;  %v151_v19 = vld [vmem:[#allocation8 + $0x78] sm:$0xff]  ;;  %v165_v21 = vld [vmem:[#allocation8 + $0xe8] sm:$0xff]  ;;  %v117_v22 = vld [vmem:[#allocation10 + $0x90] sm:$0xff] }
  0x1e   :  { %245 = vmatpush.msra.mxu3 %v126_v10  ;;  %221 = vmatpush.msra.mxu2 %v168_v17  ;;  %v162_v23 = vld [vmem:[#allocation8 + $0xd0] sm:$0xff]  ;;  %v148_v24 = vld [vmem:[#allocation8 + $0x60] sm:$0xff]  ;;  %v149_v25 = vld [vmem:[#allocation8 + $0x68] sm:$0xff] }
  0x1f   :  { %184 = vmatpush.msra.mxu0 %v157_v11  ;;  %204 = vmatpush.msra.mxu1 %v158_v12  ;;  %v114_v26 = vld [vmem:[#allocation10 + $0x78] sm:$0xff]  ;;  %v145_v28 = vld [vmem:[#allocation8 + $0x48] sm:$0xff]  ;;  %v146_v29 = vld [vmem:[#allocation8 + $0x50] sm:$0xff] }
  0x20   :  { %246 = vmatpush.msra.mxu3 %v123_v13  ;;  %222 = vmatpush.msra.mxu2 %v165_v21  ;;  %v159_v27 = vld [vmem:[#allocation8 + $0xb8] sm:$0xff]  ;;  %v111_v30 = vld [vmem:[#allocation10 + $0x60] sm:$0xff]  ;;  %v142_v32 = vld [vmem:[#allocation8 + $0x30] sm:$0xff] }
  0x21   :  { %185 = vmatpush.msra.mxu0 %v154_v15  ;;  %205 = vmatpush.msra.mxu1 %v155_v16  ;;  %v156_v31 = vld [vmem:[#allocation8 + $0xa0] sm:$0xff]  ;;  %v143_v33 = vld [vmem:[#allocation8 + $0x38] sm:$0xff]  ;;  %v108_v34 = vld [vmem:[#allocation10 + $0x48] sm:$0xff] }
  0x22   :  { %247 = vmatpush.msra.mxu3 %v120_v18  ;;  %223 = vmatpush.msra.mxu2 %v162_v23  ;;  %v153_v35 = vld [vmem:[#allocation8 + $0x88] sm:$0xff]  ;;  %v139_v36 = vld [vmem:[#allocation8 + $0x18] sm:$0xff]  ;;  %v140_v37 = vld [vmem:[#allocation8 + $0x20] sm:$0xff] }
  0x23   :  { %186 = vmatpush.msra.mxu0 %v151_v19  ;;  %206 = vmatpush.msra.mxu1 %v152_v20  ;;  %v105_v38 = vld [vmem:[#allocation10 + $0x30] sm:$0xff]  ;;  %v136_v40 = vld [vmem:[#allocation8] sm:$0xff]  ;;  %v137_v41 = vld [vmem:[#allocation8 + $0x8] sm:$0xff] }
  0x24   :  { %248 = vmatpush.msra.mxu3 %v117_v22  ;;  %224 = vmatpush.msra.mxu2 %v159_v27  ;;  %v150_v39 = vld [vmem:[#allocation8 + $0x70] sm:$0xff]  ;;  %v134_v43 = vld [vmem:[#allocation10 + $0x118] sm:$0xff]  ;;  %v131_v49 = vld [vmem:[#allocation10 + $0x100] sm:$0xff] }
  0x25   :  { %187 = vmatpush.msra.mxu0 %v148_v24  ;;  %207 = vmatpush.msra.mxu1 %v149_v25  ;;  %v133_v42 = vld [vmem:[#allocation10 + $0x110] sm:$0xff]  ;;  %v102_v44 = vld [vmem:[#allocation10 + $0x18] sm:$0xff]  ;;  %v99_v50 = vld [vmem:[#allocation10] sm:$0xff] }
  0x26   :  { %249 = vmatpush.msra.mxu3 %v114_v26  ;;  %225 = vmatpush.msra.mxu2 %v156_v31  ;;  %v608_v45 = vld [vmem:[#allocation5] sm:$0xff]  ;;  %v97_v46 = vld [vmem:[#allocation7] sm:$0xff]  ;;  %v144_v51 = vld [vmem:[#allocation8 + $0x40] sm:$0xff] }
  0x27   :  { %188 = vmatpush.msra.mxu0 %v145_v28  ;;  %208 = vmatpush.msra.mxu1 %v146_v29  ;;  %v147_v47 = vld [vmem:[#allocation8 + $0x58] sm:$0xff]  ;;  %v127_v52 = vld [vmem:[#allocation10 + $0xe0] sm:$0xff]  ;;  %v128_v53 = vld [vmem:[#allocation10 + $0xe8] sm:$0xff]  ;;  %v98_v54 = vmul.f32 %v97_v46, %v608_v45 }
  0x28   :  { %250 = vmatpush.msra.mxu3 %v111_v30  ;;  %226 = vmatpush.msra.mxu2 %v153_v35  ;;  %v130_v48 = vld [vmem:[#allocation10 + $0xf8] sm:$0xff]  ;;  %v141_v55 = vld [vmem:[#allocation8 + $0x28] sm:$0xff]  ;;  %v125_v57 = vld [vmem:[#allocation10 + $0xd0] sm:$0xff] }
  0x29   :  { %189 = vmatpush.msra.mxu0 %v142_v32  ;;  %209 = vmatpush.msra.mxu1 %v143_v33  ;;  %v124_v56 = vld [vmem:[#allocation10 + $0xc8] sm:$0xff]  ;;  %v121_v59 = vld [vmem:[#allocation10 + $0xb0] sm:$0xff]  ;;  %v122_v60 = vld [vmem:[#allocation10 + $0xb8] sm:$0xff] }
  0x2a   :  { %251 = vmatpush.msra.mxu3 %v108_v34  ;;  %227 = vmatpush.msra.mxu2 %v150_v39  ;;  %v135_v58 = vld [vmem:[#allocation2] sm:$0xff]  ;;  %v138_v61 = vld [vmem:[#allocation8 + $0x10] sm:$0xff]  ;;  %v118_v62 = vld [vmem:[#allocation10 + $0x98] sm:$0xff] }
  0x2b   :  { %190 = vmatpush.msra.mxu0 %v139_v36  ;;  %210 = vmatpush.msra.mxu1 %v140_v37  ;;  %v119_v63 = vld [vmem:[#allocation10 + $0xa0] sm:$0xff]  ;;  %v116_v1 = vld [vmem:[#allocation10 + $0x88] sm:$0xff]  ;;  %v113_v3 = vld [vmem:[#allocation10 + $0x70] sm:$0xff] }
  0x2c   :  { %252 = vmatpush.msra.mxu3 %v105_v38  ;;  %228 = vmatpush.msra.mxu2 %v147_v47  ;;  %v115_v0 = vld [vmem:[#allocation10 + $0x80] sm:$0xff]  ;;  %v112_v2 = vld [vmem:[#allocation10 + $0x68] sm:$0xff]  ;;  %v109_v4 = vld [vmem:[#allocation10 + $0x50] sm:$0xff] }
  0x2d   :  { %191 = vmatpush.msra.mxu0 %v136_v40  ;;  %211 = vmatpush.msra.mxu1 %v137_v41  ;;  %v110_v5 = vld [vmem:[#allocation10 + $0x58] sm:$0xff]  ;;  %v107_v7 = vld [vmem:[#allocation10 + $0x40] sm:$0xff]  ;;  %v104_v9 = vld [vmem:[#allocation10 + $0x28] sm:$0xff] }
  0x2e   :  { %253 = vmatpush.msra.mxu3 %v102_v44  ;;  %229 = vmatpush.msra.mxu2 %v144_v51  ;;  %v106_v6 = vld [vmem:[#allocation10 + $0x38] sm:$0xff]  ;;  %v103_v8 = vld [vmem:[#allocation10 + $0x20] sm:$0xff]  ;;  %v100_v10 = vld [vmem:[#allocation10 + $0x8] sm:$0xff] }
  0x2f   :  { %263 = vmatpush.msrb.mxu0 %v133_v42  ;;  %283 = vmatpush.msrb.mxu1 %v134_v43  ;;  %v101_v11 = vld [vmem:[#allocation10 + $0x10] sm:$0xff]  ;;  %v299_v14 = vld [vmem:[%s630_s5] sm:$0x7]  ;;  %s557_s5 = smov [#allocation11]  }
  0x30   :  { %254 = vmatpush.msra.mxu3 %v99_v50  ;;  %230 = vmatpush.msra.mxu2 %v141_v55  ;;  %v302_v16 = vperm.slane %v299_v14, 1  ;;  %v303_v17 = vperm.slane %v299_v14, 2  ;;  %v301_v32 = vperm.slane %v299_v14, 0  ;;  %s358_s21 = sshll.u32 %s557_s5, 4  ;;  %s359_s21 = int_to_ptr.vmem [resolvable:$true] %s358_s21 }
  0x31   :  { %264 = vmatpush.msrb.mxu0 %v130_v48  ;;  %284 = vmatpush.msrb.mxu1 %v131_v49 }
  0x32   :  { %375 = vmatmul.msk.f32.vlgmr.msra.gmra.mxu3 %vm172_vm0, %v98_v54  ;;  %372 = vmatmul.msk.f32.vlgmr.msra.gmra.mxu0 %vm172_vm0, %v135_v58 }
  0x33   :  { %265 = vmatpush.msrb.mxu0 %v127_v52  ;;  %285 = vmatpush.msrb.mxu1 %v128_v53 }
  0x34   :  { %373 = vmatmul.msk.f32.vlgmr.msra.gmra.mxu1 %vm172_vm0, %v135_v58  ;;  %231 = vmatpush.msra.mxu2 %v138_v61 }
  0x35   :  { %266 = vmatpush.msrb.mxu0 %v124_v56  ;;  %286 = vmatpush.msrb.mxu1 %v125_v57 }
  0x36   :  { %374 = vmatmul.msk.f32.vlgmr.msra.gmra.mxu2 %vm172_vm0, %v135_v58 }
  0x37   :  { %267 = vmatpush.msrb.mxu0 %v121_v59  ;;  %287 = vmatpush.msrb.mxu1 %v122_v60 }
  0x39   :  { %268 = vmatpush.msrb.mxu0 %v118_v62  ;;  %288 = vmatpush.msrb.mxu1 %v119_v63 }
  0x3b   :  { %269 = vmatpush.msrb.mxu0 %v115_v0  ;;  %289 = vmatpush.msrb.mxu1 %v116_v1 }
  0x3d   :  { %270 = vmatpush.msrb.mxu0 %v112_v2  ;;  %290 = vmatpush.msrb.mxu1 %v113_v3 }
  0x3f   :  { %271 = vmatpush.msrb.mxu0 %v109_v4  ;;  %291 = vmatpush.msrb.mxu1 %v110_v5 }
  0x41   :  { %272 = vmatpush.msrb.mxu0 %v106_v6  ;;  %292 = vmatpush.msrb.mxu1 %v107_v7 }
  0x43   :  { %273 = vmatpush.msrb.mxu0 %v103_v8  ;;  %293 = vmatpush.msrb.mxu1 %v104_v9 }
  0x45   :  { %274 = vmatpush.msrb.mxu0 %v100_v10  ;;  %294 = vmatpush.msrb.mxu1 %v101_v11 }
  0x46   :  { %376 = vmatmul.msk.f32.vlgmr.msrb.gmra.mxu0 %vm172_vm0, %v98_v54  ;;  %377 = vmatmul.msk.f32.vlgmr.msrb.gmra.mxu1 %vm172_vm0, %v98_v54 }
  0xaf   :  { %v193_v12 = vpop.f32.mrf.mxu0 }
  0xb1   :  { %v213_v13 = vpop.f32.mrf.mxu1 }
  0xb5   :  { %v256_v29 = vpop.f32.mrf.mxu3 }
  0xb6   :  { %v257_v31 = vadd.f32 %v256_v29, %v193_v12 }
  0xb8   :  { %v307_v34 = vadd.f32 %v301_v32, %v257_v31 }
  0xb9   :  { %v233_v15 = vpop.f32.mrf.mxu2 }
  0xc3   :  { %v276_v18 = vpop.f32.mrf.mxu0  ;;  %v296_v19 = vpop.f32.mrf.mxu1 }
  0xc4   :  { %v277_v20 = vadd.f32 %v276_v18, %v213_v13  ;;  %v297_v21 = vadd.f32 %v296_v19, %v233_v15 }
  0xc6   :  { %v308_v22 = vadd.f32 %v302_v16, %v277_v20  ;;  %v309_v23 = vadd.f32 %v303_v17, %v297_v21 }
  0xc8   :  { %v378_v24 = vmul.f32 -1.442695, %v308_v22  ;;  %v379_v25 = vmul.f32 -1.442695, %v309_v23 }
  0xca   :  { %388 = vpow2.f32 %v378_v24 }
  0xcb   :  { %390 = vpow2.f32 %v379_v25 }
  0xd0   :  { %v389_v26 = vpop.eup %388 }
  0xd1   :  { %v391_v27 = vpop.eup %390  ;;  %v314_v28 = vadd.f32 1.0, %v389_v26 }
  0xd2   :  { %v333_v30 = vadd.f32 1.0, %v391_v27 }
  0xd3   :  { %392 = vrcp.f32 %v314_v28  ;;  %v326_v40 = vand.u32 2147483648, %v314_v28  ;;  %v324_v42 = vand.u32 2147483647, %v314_v28  ;;  %vm320_vm3 = vweird.f32 %v314_v28 }
  0xd4   :  { %394 = vrcp.f32 %v333_v30  ;;  %v345_v43 = vand.u32 2147483648, %v333_v30  ;;  %v343_v46 = vand.u32 2147483647, %v333_v30  ;;  %vm339_vm5 = vweird.f32 %v333_v30 }
  0xd5   :  { %396 = vtanh.f32 %v307_v34  ;;  %v327_v48 = vor.u32 1.1754944e-38, %v326_v40  ;;  %vm325_vm6 = vcmp.eq.f32.partialorder %v324_v42, 8.507059e+37 }
  0xd6   :  { %v346_v51 = vor.u32 1.1754944e-38, %v345_v43  ;;  %vm344_vm8 = vcmp.eq.f32.partialorder %v343_v46, 8.507059e+37 }
  0xd9   :  { %v393_v33 = vpop.eup %392 }
  0xda   :  { %v395_v35 = vpop.eup %394  ;;  %v316_v36 = vmul.f32 %v393_v33, %v314_v28  ;;  %vm321_vm1 = vweird.f32 %v393_v33 }
  0xdb   :  { %v335_v37 = vmul.f32 %v395_v35, %v333_v30  ;;  %vm340_vm2 = vweird.f32 %v395_v35  ;;  %vm322_vm4 = vmor %vm320_vm3, %vm321_vm1  ;;  %v397_v52 = vpop.eup %396 }
  0xdc   :  { %v317_v38 = vsub.f32 1.0, %v316_v36  ;;  %vm341_vm7 = vmor %vm339_vm5, %vm340_vm2 }
  0xdd   :  { %v336_v39 = vsub.f32 1.0, %v335_v37 }
  0xde   :  { %v318_v41 = vmul.f32 %v393_v33, %v317_v38 }
  0xdf   :  { %v337_v44 = vmul.f32 %v395_v35, %v336_v39 }
  0xe0   :  { %v319_v47 = vadd.f32 %v393_v33, %v318_v41 }
  0xe1   :  { %v338_v49 = vadd.f32 %v395_v35, %v337_v44 }
  0xe2   :  { %v323_v50 = vsel %vm322_vm4, %v393_v33, %v319_v47 }
  0xe3   :  { %v328_v53 = vsel %vm325_vm6, %v327_v48, %v323_v50  ;;  %v342_v54 = vsel %vm341_vm7, %v395_v35, %v338_v49 }
  0xe4   :  { %v347_v55 = vsel %vm344_vm8, %v346_v51, %v342_v54  ;;  %v349_v56 = vmul.f32 %v397_v52, %v328_v53 }
  0xe5   :  { %v350_v57 = vmul.f32 %v347_v55, %v608_v45 }
  0xe7   :  { %v351_v58 = vadd.f32 %v350_v57, %v349_v56 }
  0xe9   :  { %352 = vst.msk [vmem:[#allocation11] sm:$0xff] %vm172_vm0, %v351_v58 }
  0xea   :  { %363 = dma.vmem_to_hbm [thread:$0]  %s359_s21, 128, %s361_s24, [#allocation4]  }
  0xeb   :  { %548 = dma.done.wait [#allocation4], 128  }
  0xec   :  { %549 = vsyncadd [#allocation4], 4294967168 }
  0xed   :  { %368 = vsyncpa [#allocation3], 1 }
  0xee   :  { %369 = vsyncpa [#allocation6], 1 }
  0xef   :  { %370 = vsyncpa [#allocation9], 1 }
  0xf0   :  { %371 = vsyncpa [#allocation4], 1 }

</bundles_post_ra>
